<compile_context>
chip_gen: v6e
topology: v6e:2x2x1
jax: 0.10.0
libtpu: 0.0.40
codegen_flags: <defaults>
</compile_context>

<pallas_src>
import jax
import jax.numpy as jnp
from jax.experimental import pallas as pl
from jax.experimental.pallas import tpu as pltpu


def _dsv_fused_kernel(x_ref, wb_ref, b_ref, rwt_ref, rhb_ref, o_ref):
    # x_ref  : (1, Cin*H, W)        compute dtype
    # wb_ref : (Cout*H, Cin*H)      compute dtype   kron(W_1x1, I_H)
    # b_ref  : (Cout*H, 1)          float32         bias repeated over H
    # rwt_ref: (W, Wout)            compute dtype   Rw^T
    # rhb_ref: (row_tile, Cout*H)   compute dtype   row-tile of kron(I_Cout, Rh)
    # o_ref  : (1, row_tile, Wout)  float32
    x = x_ref[0]                                                    # (Cin*H, W)
    # 1x1 conv for all output channels at once, f32 accumulation, f32 bias.
    y = jnp.dot(wb_ref[...], x, preferred_element_type=jnp.float32)
    y = (y + b_ref[...]).astype(x.dtype)                            # (Cout*H, W)
    # Separable bilinear upsample: width then height, f32 accumulation.
    z = jnp.dot(y, rwt_ref[...], preferred_element_type=jnp.float32)
    z = z.astype(x.dtype)                                           # (Cout*H, Wout)
    o_ref[0] = jnp.dot(rhb_ref[...], z, preferred_element_type=jnp.float32)


def _bilinear_matrix(in_size, out_size):
    """1-D interpolation matrix matching nn.Upsample(mode='bilinear',
    align_corners=False): out = M @ in."""
    ratio = in_size / out_size
    i = jnp.arange(out_size, dtype=jnp.float32)
    src = jnp.maximum((i + 0.5) * ratio - 0.5, 0.0)   # PyTorch clamps src >= 0
    i0 = jnp.floor(src).astype(jnp.int32)
    lam = src - i0.astype(jnp.float32)
    i1 = jnp.minimum(i0 + 1, in_size - 1)
    rows = jnp.arange(out_size)
    mat = jnp.zeros((out_size, in_size), jnp.float32)
    mat = mat.at[rows, i0].add(1.0 - lam)
    mat = mat.at[rows, i1].add(lam)
    return mat


def _pick_row_tile(total_rows, cap=256):
    """Largest divisor of total_rows that is a multiple of 8 and <= cap.
    Falls back to the full extent (always a legal block dim)."""
    if total_rows <= cap:
        return total_rows
    for t in range(cap, 7, -1):
        if total_rows % t == 0 and t % 8 == 0:
            return t
    return total_rows


def unet_dsv_forward(x, weight, bias, scale_factor, *, compute_dtype=jnp.float32):
    """x: (N, Cin, H, W) f32; weight: (Cout, Cin, 1, 1); bias: (Cout,).
    Returns conv1x1(x) bilinearly upsampled by integer `scale_factor`,
    shape (N, Cout, H*scale, W*scale), float32."""
    N, Cin, H, W = x.shape
    Cout = weight.shape[0]
    Hout, Wout = H * scale_factor, W * scale_factor

    # ---- JAX-side parameter plumbing (tiny constants, traced once) ---------
    x3 = x.reshape(N, Cin * H, W).astype(compute_dtype)         # free reshape of NCHW
    w2 = weight.reshape(Cout, Cin).astype(jnp.float32)
    wb = jnp.kron(w2, jnp.eye(H, dtype=jnp.float32))            # (Cout*H, Cin*H)
    b_rep = jnp.repeat(bias.astype(jnp.float32), H)[:, None]    # (Cout*H, 1)
    rh = _bilinear_matrix(H, Hout)                              # (Hout, H)
    rwt = _bilinear_matrix(W, Wout).T                           # (W, Wout)
    rhb = jnp.kron(jnp.eye(Cout, dtype=jnp.float32), rh)        # (Cout*Hout, Cout*H)

    wb = wb.astype(compute_dtype)
    rwt = rwt.astype(compute_dtype)
    rhb = rhb.astype(compute_dtype)

    rows_total = Cout * Hout
    row_tile = _pick_row_tile(rows_total)
    n_row_tiles = rows_total // row_tile

    out = pl.pallas_call(
        _dsv_fused_kernel,
        out_shape=jax.ShapeDtypeStruct((N, rows_total, Wout), jnp.float32),
        grid=(N, n_row_tiles),
        in_specs=[
            pl.BlockSpec((1, Cin * H, W), lambda n, t: (n, 0, 0)),       # x (per batch)
            pl.BlockSpec((Cout * H, Cin * H), lambda n, t: (0, 0)),      # kron'd conv W
            pl.BlockSpec((Cout * H, 1), lambda n, t: (0, 0)),            # bias column
            pl.BlockSpec((W, Wout), lambda n, t: (0, 0)),                # Rw^T
            pl.BlockSpec((row_tile, Cout * H), lambda n, t: (t, 0)),     # Rh block rows
        ],
        out_specs=pl.BlockSpec((1, row_tile, Wout), lambda n, t: (n, t, 0)),
        compiler_params=pltpu.CompilerParams(
            dimension_semantics=("parallel", "parallel"),
            vmem_limit_bytes=32 * 1024 * 1024,
        ),
    )(x3, wb, b_rep, rwt, rhb)

    # (N, Cout*Hout, Wout) -> (N, Cout, Hout, Wout): free metadata reshape.
    return out.reshape(N, Cout, Hout, Wout)


if __name__ == "__main__":
    key = jax.random.PRNGKey(0)
    k1, k2, k3 = jax.random.split(key, 3)

    N, Cin, H, W = 2, 4, 16, 16
    Cout, scale = 3, 8            # 16x16 -> 128x128 (lane-dense output width)

    x = jax.random.normal(k1, (N, Cin, H, W), dtype=jnp.float32)
    # Deterministic synthetic Conv2d(in, out, k=1) parameters.
    weight = 0.1 * jax.random.normal(k2, (Cout, Cin, 1, 1), dtype=jnp.float32)
    bias = 0.1 * jax.random.normal(k3, (Cout,), dtype=jnp.float32)

    fwd_f32 = jax.jit(lambda a, w, b: unet_dsv_forward(a, w, b, scale,
                                                       compute_dtype=jnp.float32))
    fwd_bf16 = jax.jit(lambda a, w, b: unet_dsv_forward(a, w, b, scale,
                                                        compute_dtype=jnp.bfloat16))

    out = jax.block_until_ready(fwd_f32(x, weight, bias))
    out_bf16 = jax.block_until_ready(fwd_bf16(x, weight, bias))

    # Pure-JAX reference for correctness.
    y_ref = (jnp.einsum("nchw,oc->nohw", x, weight.reshape(Cout, Cin))
             + bias[None, :, None, None])
    rh = _bilinear_matrix(H, H * scale)
    rw = _bilinear_matrix(W, W * scale)
    ref = jnp.einsum("Hh,nchw,Ww->ncHW", rh, y_ref, rw)

    assert out.shape == (N, Cout, H * scale, W * scale)
    assert jnp.allclose(out, ref, atol=1e-4, rtol=1e-4)
    # bf16-input path (f32 accumulation / output): looser tolerance.
    assert jnp.allclose(out_bf16, ref, atol=3e-2, rtol=3e-2)
    print("KERNEL_OK")
</pallas_src>

<mosaic_0001>
module attributes {stable_mosaic.version = 11 : i64} {
  func.func private @main(%arg0: i32) attributes {dimension_semantics = [#tpu.dimension_semantics<core_parallel>], iteration_bounds = array<i64: 2>, tpu.core_type = #tpu.core_type<sc_scalar_subcore>, window_params = []} {
    return
  }
}

module attributes {stable_mosaic.version = 11 : i64} {
  func.func private @main(%arg0: i32) attributes {dimension_semantics = [#tpu.dimension_semantics<core_parallel>], iteration_bounds = array<i64: 2>, tpu.core_type = #tpu.core_type<sc_scalar_subcore>, window_params = []} {
    return
  }
}

module attributes {stable_mosaic.version = 11 : i64} {
  func.func @_dsv_fused_kernel(%arg0: i32, %arg1: i32, %arg2: memref<1x64x16xf32, #tpu.memory_space<vmem>>, %arg3: memref<48x64xf32, #tpu.memory_space<vmem>>, %arg4: memref<48x1xf32, #tpu.memory_space<vmem>>, %arg5: memref<16x128xf32, #tpu.memory_space<vmem>>, %arg6: memref<192x48xf32, #tpu.memory_space<vmem>>, %arg7: memref<1x192x128xf32, #tpu.memory_space<vmem>>) attributes {dimension_semantics = [#tpu.dimension_semantics<parallel>, #tpu.dimension_semantics<parallel>], iteration_bounds = array<i64: 2, 2>, scalar_prefetch = 0 : i64, scratch_operands = 0 : i64, tpu.core_type = #tpu.core_type<tc>, window_params = [{transform_indices = @transform_0, window_bounds = array<i64: 1, 64, 16>}, {pipeline_mode = #tpu.pipeline_mode<synchronous>, transform_indices = @transform_1, window_bounds = array<i64: 48, 64>}, {pipeline_mode = #tpu.pipeline_mode<synchronous>, transform_indices = @transform_2, window_bounds = array<i64: 48, 1>}, {pipeline_mode = #tpu.pipeline_mode<synchronous>, transform_indices = @transform_3, window_bounds = array<i64: 16, 128>}, {transform_indices = @transform_4, window_bounds = array<i64: 192, 48>}, {transform_indices = @transform_5, window_bounds = array<i64: 1, 192, 128>}]} {
    %c0 = arith.constant 0 : index
    %c0_0 = arith.constant 0 : index
    %c0_1 = arith.constant 0 : index
    %0 = vector.load %arg2[%c0, %c0_0, %c0_1] : memref<1x64x16xf32, #tpu.memory_space<vmem>>, vector<1x64x16xf32>
    %1 = vector.shape_cast %0 : vector<1x64x16xf32> to vector<64x16xf32>
    %c0_2 = arith.constant 0 : index
    %c0_3 = arith.constant 0 : index
    %2 = vector.load %arg3[%c0_2, %c0_3] : memref<48x64xf32, #tpu.memory_space<vmem>>, vector<48x64xf32>
    %cst = arith.constant dense<0.000000e+00> : vector<48x16xf32>
    %3 = tpu.matmul %2, %1, %cst {dimension_numbers = #tpu.dot_dimension_numbers<[1], [0], [0], [1], [0, 0, 1, 1], [], []>} : vector<48x64xf32>, vector<64x16xf32>, vector<48x16xf32> -> vector<48x16xf32>
    %c0_4 = arith.constant 0 : index
    %c0_5 = arith.constant 0 : index
    %4 = vector.load %arg4[%c0_4, %c0_5] : memref<48x1xf32, #tpu.memory_space<vmem>>, vector<48x1xf32>
    %5 = vector.broadcast %4 : vector<48x1xf32> to vector<48x16xf32>
    %6 = arith.addf %3, %5 : vector<48x16xf32>
    %c0_6 = arith.constant 0 : index
    %c0_7 = arith.constant 0 : index
    %7 = vector.load %arg5[%c0_6, %c0_7] : memref<16x128xf32, #tpu.memory_space<vmem>>, vector<16x128xf32>
    %cst_8 = arith.constant dense<0.000000e+00> : vector<48x128xf32>
    %8 = tpu.matmul %6, %7, %cst_8 {dimension_numbers = #tpu.dot_dimension_numbers<[1], [0], [0], [1], [0, 0, 1, 1], [], []>} : vector<48x16xf32>, vector<16x128xf32>, vector<48x128xf32> -> vector<48x128xf32>
    %c0_9 = arith.constant 0 : index
    %c0_10 = arith.constant 0 : index
    %9 = vector.load %arg6[%c0_9, %c0_10] : memref<192x48xf32, #tpu.memory_space<vmem>>, vector<192x48xf32>
    %cst_11 = arith.constant dense<0.000000e+00> : vector<192x128xf32>
    %10 = tpu.matmul %9, %8, %cst_11 {dimension_numbers = #tpu.dot_dimension_numbers<[1], [0], [0], [1], [0, 0, 1, 1], [], []>} : vector<192x48xf32>, vector<48x128xf32>, vector<192x128xf32> -> vector<192x128xf32>
    %c0_12 = arith.constant 0 : index
    %c0_13 = arith.constant 0 : index
    %c0_14 = arith.constant 0 : index
    %11 = vector.load %arg7[%c0_12, %c0_13, %c0_14] : memref<1x192x128xf32, #tpu.memory_space<vmem>>, vector<1x192x128xf32>
    %12 = vector.shape_cast %11 : vector<1x192x128xf32> to vector<192x128xf32>
    %13 = vector.shape_cast %10 : vector<192x128xf32> to vector<1x192x128xf32>
    tpu.vector_store %arg7[%c0_12, %c0_13, %c0_14], %13 {strides = array<i32>} : memref<1x192x128xf32, #tpu.memory_space<vmem>>, vector<1x192x128xf32>,
    return
  }
  func.func @transform_0(%arg0: i32, %arg1: i32) -> (i32, i32, i32) {
    %c0_i32 = arith.constant 0 : i32
    %c0_i32_0 = arith.constant 0 : i32
    %c0_i32_1 = arith.constant 0 : i32
    return %arg0, %c0_i32, %c0_i32_0 : i32, i32, i32
  }
  func.func @transform_1(%arg0: i32, %arg1: i32) -> (i32, i32) {
    %c0_i32 = arith.constant 0 : i32
    %c0_i32_0 = arith.constant 0 : i32
    %c0_i32_1 = arith.constant 0 : i32
    return %c0_i32, %c0_i32_0 : i32, i32
  }
  func.func @transform_2(%arg0: i32, %arg1: i32) -> (i32, i32) {
    %c0_i32 = arith.constant 0 : i32
    %c0_i32_0 = arith.constant 0 : i32
    %c0_i32_1 = arith.constant 0 : i32
    return %c0_i32, %c0_i32_0 : i32, i32
  }
  func.func @transform_3(%arg0: i32, %arg1: i32) -> (i32, i32) {
    %c0_i32 = arith.constant 0 : i32
    %c0_i32_0 = arith.constant 0 : i32
    %c0_i32_1 = arith.constant 0 : i32
    return %c0_i32, %c0_i32_0 : i32, i32
  }
  func.func @transform_4(%arg0: i32, %arg1: i32) -> (i32, i32) {
    %c0_i32 = arith.constant 0 : i32
    %c0_i32_0 = arith.constant 0 : i32
    return %arg1, %c0_i32 : i32, i32
  }
  func.func @transform_5(%arg0: i32, %arg1: i32) -> (i32, i32, i32) {
    %c0_i32 = arith.constant 0 : i32
    %c0_i32_0 = arith.constant 0 : i32
    return %arg0, %arg1, %c0_i32 : i32, i32, i32
  }
}

</mosaic_0001>

<bundles_post_ra>
// kernel: _lambda_.1
= control target key start
LH: loop header
LB: loop body
LE: loop exit
PB: predicated region body
PF: predicated region fallthrough
CT: control target
= control target key end

     0   :  { %10 = vsyncpa [#allocation3], 0  ;;  %s1634_s0 = inlined_call_operand.vmem [shape: f32[2,64,16], index: 0, kind: input, shape index: {}]   ;;  %s1635_s1 = inlined_call_operand.vmem [shape: f32[48,64], index: 1, kind: input, shape index: {}]   ;;  %s1636_s2 = inlined_call_operand.vmem [shape: f32[48,1], index: 2, kind: input, shape index: {}]   ;;  %s1637_s3 = inlined_call_operand.vmem [shape: f32[16,128], index: 3, kind: input, shape index: {}]   ;;  %s1638_s4 = inlined_call_operand.vmem [shape: f32[384,48], index: 4, kind: input, shape index: {}]   ;;  %s1639_s5 = inlined_call_operand.hbm [shape: f32[2,384,128], index: 5, kind: output, shape index: {}]  }
   0x1   :  { %12 = vsyncpa [#allocation3 + $0x1], 0  ;;  %s1354_s18 = smov 0   ;;  %s1356_s19 = smov 0  }
   0x2   :  { %s1358_s20 = smov 0   ;;  %s1360_s21 = smov 0  }
   0x3   :  { %s1362_s22 = smov 0   ;;  %s1364_s23 = smov 0  }
   0x4   :  { %s1366_s24 = smov 0   ;;  %s1368_s25 = smov 0  }
   0x5 LB: > { %s950_s26 = sadd.s32 4294967295, %s1318_s25   ;;  %s951_s27 = sadd.s32 4294967294, %s1318_s25   ;;  %s1318_s25 = sphi %s1368_s25, %s18_s25   ;;  %s1314_s24 = sphi %s1366_s24, %s1651_s24   ;;  %s1310_s23 = sphi %s1364_s23, %s1650_s23   ;;  %s1306_s22 = sphi %s1362_s22, %s1649_s22   ;;  %s1302_s21 = sphi %s1360_s21, %s1648_s21   ;;  %s1298_s20 = sphi %s1358_s20, %s1647_s20   ;;  %s1294_s19 = sphi %s1356_s19, %s1646_s19   ;;  %s1290_s18 = sphi %s1354_s18, %s1645_s18  }
   0x6   : > { %s27_s28 = sadd.s32 1, %s1310_s23  ;;  %s30_s29 = sadd.s32 1, %s1314_s24 }
   0x7   : > { %p28_p0 = scmp.ge.s32.totalorder %s27_s28, 2  ;;  %p164_p1 = scmp.ne.s32.totalorder %s1298_s20, %s1294_s19 }
   0x8   : > { %p165_p2 = scmp.eq.s32.totalorder %s950_s26, 3  ;;  %p170_p5 = scmp.ne.s32.totalorder %s1294_s19, %s1290_s18 }
   0x9   : > { %s1653_s28 = smov (%p28_p0, %s27_s28), 0  ;;  %s1655_s29 = smov (!%p28_p0, %s30_s29), %s1314_s24 }
   0xa   : > { %s150_s30 = ssub.s32 %s1310_s23, %s1653_s28  ;;  %p1405_p3 = por %p165_p2, %p164_p1 }
   0xb   : > { %p32_p4 = scmp.ge.s32.totalorder %s1655_s29, 2  ;;  %p171_p6 = scmp.eq.s32.totalorder %s951_s27, 3 }
   0xc   : > { %p954_p7 = scmp.ge.s32.totalorder %s1318_s25, 1  ;;  %p215_p9 = scmp.lt.s32.totalorder %s1318_s25, 5 }
   0xd   : > { %s1657_s29 = smov (%p32_p4, %s1655_s29), 0  ;;  %p1414_p8 = por %p171_p6, %p170_p5 }
   0xe   : > { %1642 = sst [smem:[#allocation5_spill]] %s1657_s29  ;;  %s149_s8 = ssub.s32 %s1314_s24, %s1657_s29 }
   0xf   : > { %s154_s9 = sadd.s32 1, %s1298_s20  ;;  %s151_s10 = sor.u32 %s150_s30, %s149_s8 }
  0x10   : > { %p216_p10 = pnand %p954_p7, %p215_p9  ;;  %p152_p11 = scmp.eq.s32.totalorder %s151_s10, 0 }
  0x11   : > { %p248_p12 = scmp.lt.s32.totalorder (!%p216_p10), %s1306_s22, 1  ;;  %s1485_s26 = smul.u32 (!%p216_p10), 24, %s1302_s21 }
  0x12   : > { %s1423_s11 = scalar_select %p152_p11, %s1298_s20, %s154_s9  }
  0x13   : > { %219 = sbr.rel (%p216_p10) target bundleno = 693 (0x2b5), region = 40  ;;  %p254_p13 = scmp.lt.s32.totalorder (!%p216_p10), %s1485_s26, 47 }
  0x14   : > { %s245_s21 = sand.u32 (!%p216_p10), 1, %s1294_s19   ;;  %s1321_s8 = smov (!%p216_p10), [#allocation2]  }
  0x15   : > { %s1230_s9 = sshll.u32 (!%p216_p10), %s1321_s8, 4  ;;  %s1231_s9 = int_to_ptr.vmem [resolvable:$false] %s1230_s9 }
  0x18   : > { %v268_v0 = vld [vmem:[%s1635_s1] sm:$0xff]  ;;  %vm310_vm0 = vcmask 523264   ;;  %v1320_v1 = vmov 0   ;;  %s249_s14 = scalar_select %p248_p12, %s1306_s22, 1  ;;  %v276_v3 = vld [vmem:[%s1636_s2 + $0x10] sm:$0xff]  ;;  %v275_v4 = vld [vmem:[%s1636_s2 + $0x8] sm:$0xff] }
  0x19   : > { %1066 = vmatprep.mubr.msk.f32.mxu0 %vm310_vm0, %v268_v0  ;;  %1224 = vset.pattern.permute.xlu0 %v1320_v1  ;;  %v274_v2 = vld [vmem:[%s1636_s2] sm:$0xff]  ;;  %v277_v5 = vld [vmem:[%s1636_s2 + $0x18] sm:$0xff]  ;;  %v279_v10 = vld [vmem:[%s1636_s2 + $0x28] sm:$0xff]  ;;  %vm426_vm1 = vcmask 130048   ;;  %vm564_vm2 = vcmask 392192  }
  0x1a   : > { %1225 = vset.pattern.permute.xlu1 %v1320_v1  ;;  %282 = vperm.xlu0 %1224, %v274_v2   ;;  %s997_s27 = sshll.u32 %s249_s14, 6  ;;  %v278_v9 = vld [vmem:[%s1636_s2 + $0x20] sm:$0xff]  ;;  %v269_v16 = vld [vmem:[%s1635_s1 + $0x8] sm:$0xff]  ;;  %v270_v17 = vld [vmem:[%s1635_s1 + $0x10] sm:$0xff]  ;;  %s1149_s14 = smul.u32 48, %s1306_s22 }
  0x1b   : > { %292 = vperm.xlu1 %1225, %v276_v3   ;;  %s252_s12 = scalar_lea.vmem %s1634_s0, %s997_s27  ;;  %v271_v18 = vld [vmem:[%s1635_s1 + $0x18] sm:$0xff]  ;;  %v272_v19 = vld [vmem:[%s1635_s1 + $0x20] sm:$0xff]  ;;  %v273_v20 = vld [vmem:[%s1635_s1 + $0x28] sm:$0xff] }
  0x1c   : > { %v267_v6 = vld [vmem:[%s252_s12 + $0x38] sm:$0xff]  ;;  %v266_v7 = vld [vmem:[%s252_s12 + $0x30] sm:$0xff]  ;;  %v265_v8 = vld [vmem:[%s252_s12 + $0x28] sm:$0xff]  ;;  %s255_s27 = scalar_select %p254_p13, %s1485_s26, 47 }
  0x1d   : > { %1050 = vmatprep.subr.mxu0 %v267_v6  ;;  %v264_v11 = vld [vmem:[%s252_s12 + $0x20] sm:$0xff]  ;;  %v263_v12 = vld [vmem:[%s252_s12 + $0x18] sm:$0xff]  ;;  %v262_v13 = vld [vmem:[%s252_s12 + $0x10] sm:$0xff]  ;;  %s859_s15 = sadd.s32 %s1149_s14, %s1485_s26  ;;  %s1583_s26 = scalar_lea.sflag [#allocation3], %s245_s21 }
  0x1e   : > { %287 = vperm.xlu0 %1224, %v275_v4   ;;  %1051 = vmatpush3.msra.mxu0 %v267_v6  ;;  %v261_v14 = vld [vmem:[%s252_s12 + $0x8] sm:$0xff]  ;;  %v260_v15 = vld [vmem:[%s252_s12] sm:$0xff]  ;;  %s957_s30 = sshll.u32 %s255_s27, 3  ;;  %s1148_s12 = smul.u32 192, %s245_s21 }
  0x1f   : > { %297 = vperm.xlu1 %1225, %v277_v5   ;;  %1052 = vmatprep.subr.mxu0 %v266_v7  ;;  %v425_v21 = vld [vmem:[%s1637_s3 + $0x8] sm:$0xff]  ;;  %v424_v22 = vld [vmem:[%s1637_s3] sm:$0xff]  ;;  %s1492_s10 = scalar_lea.vmem %s1638_s4, %s957_s30  ;;  %s994_s16 = sshll.u32 %s859_s15, 7 }
  0x20   : > { %1053 = vmatpush3.msra.mxu0 %v266_v7  ;;  %1075 = vmatprep.subr.mxu1 %v425_v21  ;;  %v548_v41 = vld [vmem:[%s1492_s10 + $0x40] sm:$0xff]  ;;  %v549_v49 = vld [vmem:[%s1492_s10 + $0x48] sm:$0xff]  ;;  %v550_v51 = vld [vmem:[%s1492_s10 + $0x50] sm:$0xff]  ;;  %s1545_s13 = scalar_lea.vmem [#allocation2], %s1148_s12  ;;  %s1574_s22 = scalar_lea.hbm %s1639_s5, %s994_s16 }
  0x21   : > { %1054 = vmatprep.subr.mxu0 %v265_v8  ;;  %1076 = vmatpush3.msra.mxu1 %v425_v21  ;;  %v540_v42 = vld [vmem:[%s1492_s10] sm:$0xff]  ;;  %v541_v50 = vld [vmem:[%s1492_s10 + $0x8] sm:$0xff]  ;;  %v542_v52 = vld [vmem:[%s1492_s10 + $0x10] sm:$0xff]  ;;  %s862_s17 = sshll.u32 %s1545_s13, 4  ;;  %s1577_s17 = int_to_ptr.vmem [resolvable:$true] %s862_s17 }
  0x22   : > { %302 = vperm.xlu0 %1224, %v278_v9   ;;  %1055 = vmatpush3.msra.mxu0 %v265_v8  ;;  %v551_v53 = vld [vmem:[%s1492_s10 + $0x58] sm:$0xff]  ;;  %v552_v55 = vld [vmem:[%s1492_s10 + $0x60] sm:$0xff]  ;;  %v553_v57 = vld [vmem:[%s1492_s10 + $0x68] sm:$0xff]  ;;  %s1226_s30 = scalar_lea.vmem %s1577_s17, 3072  ;;  %p1233_p4 = scmp.lt.s32.totalorder %s1577_s17, %s1231_s9 }
  0x23   : > { %307 = vperm.xlu1 %1225, %v279_v10   ;;  %1056 = vmatprep.subr.mxu0 %v264_v11  ;;  %v543_v54 = vld [vmem:[%s1492_s10 + $0x18] sm:$0xff]  ;;  %v544_v56 = vld [vmem:[%s1492_s10 + $0x20] sm:$0xff]  ;;  %v545_v58 = vld [vmem:[%s1492_s10 + $0x28] sm:$0xff]  ;;  %p1227_p0 = scmp.ne.s32.totalorder %s1577_s17, %s1226_s30 }
  0x24   : > { %1057 = vmatpush3.msra.mxu0 %v264_v11  ;;  %1077 = vmatprep.subr.mxu1 %v424_v22  ;;  %v554_v59 = vld [vmem:[%s1492_s10 + $0x70] sm:$0xff]  ;;  %v555_v61 = vld [vmem:[%s1492_s10 + $0x78] sm:$0xff]  ;;  %v556_v63 = vld [vmem:[%s1492_s10 + $0x80] sm:$0xff] }
  0x25   : > { %1058 = vmatprep.subr.mxu0 %v263_v12  ;;  %1078 = vmatpush3.msra.mxu1 %v424_v22  ;;  %v546_v60 = vld [vmem:[%s1492_s10 + $0x30] sm:$0xff]  ;;  %v547_v62 = vld [vmem:[%s1492_s10 + $0x38] sm:$0xff]  ;;  %v557_v0 = vld [vmem:[%s1492_s10 + $0x88] sm:$0xff]  ;;  %p1228_p1 = pnand %p1227_p0, %p1405_p3 }
  0x26   : > { %1059 = vmatpush3.msra.mxu0 %v263_v12  ;;  %v558_v1 = vld [vmem:[%s1492_s10 + $0x90] sm:$0xff]  ;;  %v559_v2 = vld [vmem:[%s1492_s10 + $0x98] sm:$0xff]  ;;  %v560_v3 = vld [vmem:[%s1492_s10 + $0xa0] sm:$0xff] }
  0x27   : > { %1060 = vmatprep.subr.mxu0 %v262_v13  ;;  %v561_v4 = vld [vmem:[%s1492_s10 + $0xa8] sm:$0xff]  ;;  %v562_v5 = vld [vmem:[%s1492_s10 + $0xb0] sm:$0xff]  ;;  %v563_v6 = vld [vmem:[%s1492_s10 + $0xb8] sm:$0xff]  ;;  %p1229_p2 = pneg %p1228_p1  ;;  %s1232_s10 = scalar_lea.vmem %s1231_s9, 6144 }
  0x28   : > { %1061 = vmatpush3.msra.mxu0 %v262_v13  ;;  %p1234_p5 = scmp.lt.s32.totalorder %s1232_s10, %s1226_s30 }
  0x29   : > { %1062 = vmatprep.subr.mxu0 %v261_v14 }
  0x2a   : > { %1063 = vmatpush3.msra.mxu0 %v261_v14  ;;  %p1235_p6 = por %p1234_p5, %p1233_p4 }
  0x2b   : > { %1064 = vmatprep.subr.mxu0 %v260_v15 }
  0x2c   : > { %1065 = vmatpush3.msra.mxu0 %v260_v15  ;;  %p1236_p7 = pnand %p1235_p6, %p1229_p2 }
  0x2d   : > { %1067 = vmatmul.mubr.msk.f32.vlgmr.msra.gmra.mxu0 %vm310_vm0, %v269_v16 }
  0x2e   : > { %1069 = vmatprep.mubr.msk.f32.mxu0 %vm310_vm0, %v270_v17 }
  0x31   : > { %1070 = vmatmul.mubr.msk.f32.gmra.mxu0 %vm310_vm0, %v271_v18 }
  0x32   : > { %1072 = vmatprep.mubr.msk.f32.mxu0 %vm310_vm0, %v272_v19 }
  0x35   : > { %1073 = vmatmul.mubr.msk.f32.gmra.mxu0 %vm310_vm0, %v273_v20 }
  0x36   : > { %1100 = vmatprep.mubr.msk.f32.mxu0 %vm564_vm2, %v540_v42 }
  0x95   : > { %v283_v23 = vpop.permute.xlu0 %282 }
  0x96   : > { %v293_v24 = vpop.permute.xlu1 %292 }
  0x99   : > { %v288_v27 = vpop.permute.xlu0 %287 }
  0x9a   : > { %v298_v31 = vpop.permute.xlu1 %297 }
  0x9d   : > { %v303_v36 = vpop.permute.xlu0 %302 }
  0x9e   : > { %v308_v38 = vpop.permute.xlu1 %307 }
  0xed   : > { %v1068_v25 = vpop.f32.mrf.mxu0 }
  0xee   : > { %v401_v29 = vadd.f32 %v1068_v25, %v288_v27 }
  0xef   : > { %v395_v26 = vpop.f32.mrf.mxu0 }
  0xf0   : > { %v396_v28 = vadd.f32 %v395_v26, %v283_v23 }
  0xf1   : > { %v1071_v30 = vpop.f32.mrf.mxu0 }
  0xf2   : > { %1079 = vmatprep.mubr.msk.f32.mxu1 %vm426_vm1, %v396_v28  ;;  %v411_v34 = vadd.f32 %v1071_v30, %v298_v31 }
  0xf3   : > { %v405_v32 = vpop.f32.mrf.mxu0  ;;  %1080 = vmatmul.mubr.msk.f32.vlgmr.msra.gmra.mxu1 %vm426_vm1, %v401_v29 }
  0xf4   : > { %v406_v33 = vadd.f32 %v405_v32, %v293_v24 }
  0xf5   : > { %v1074_v35 = vpop.f32.mrf.mxu0 }
  0xf6   : > { %1082 = vmatprep.mubr.msk.f32.mxu1 %vm426_vm1, %v406_v33  ;;  %v421_v40 = vadd.f32 %v1074_v35, %v308_v38 }
  0xf7   : > { %v415_v37 = vpop.f32.mrf.mxu0  ;;  %1083 = vmatmul.mubr.msk.f32.gmra.mxu1 %vm426_vm1, %v411_v34 }
  0xf8   : > { %v416_v39 = vadd.f32 %v415_v37, %v303_v36 }
  0xfa   : > { %1085 = vmatprep.mubr.msk.f32.mxu1 %vm426_vm1, %v416_v39 }
  0xfb   : > { %1086 = vmatmul.mubr.msk.f32.gmra.mxu1 %vm426_vm1, %v421_v40 }
  0xfc   : > { %1112 = vmatprep.mubr.msk.f32.mxu1 %vm564_vm2, %v548_v41 }
 0x1b3   : > { %v1081_v43 = vpop.f32.mrf.mxu1 }
 0x1b5   : > { %v511_v44 = vpop.f32.mrf.mxu1 }
 0x1b7   : > { %v1084_v45 = vpop.f32.mrf.mxu1 }
 0x1b9   : > { %v521_v46 = vpop.f32.mrf.mxu1 }
 0x1bb   : > { %v1087_v47 = vpop.f32.mrf.mxu1 }
 0x1bc   : > { %1088 = vmatprep.subr.mxu0 %v1087_v47  ;;  %1136 = vmatprep.subr.mxu1 %v1087_v47 }
 0x1bd   : > { %v531_v48 = vpop.f32.mrf.mxu1  ;;  %1089 = vmatpush3.msra.mxu0 %v1087_v47  ;;  %1142 = vmatpush3.msra.mxu1 %v1087_v47 }
 0x1be   : > { %1090 = vmatprep.subr.mxu0 %v531_v48  ;;  %1137 = vmatprep.subr.mxu1 %v531_v48 }
 0x1bf   : > { %1091 = vmatpush3.msra.mxu0 %v531_v48  ;;  %1143 = vmatpush3.msra.mxu1 %v531_v48 }
 0x1c0   : > { %1092 = vmatprep.subr.mxu0 %v1084_v45  ;;  %1138 = vmatprep.subr.mxu1 %v1084_v45 }
 0x1c1   : > { %1093 = vmatpush3.msra.mxu0 %v1084_v45  ;;  %1144 = vmatpush3.msra.mxu1 %v1084_v45 }
 0x1c2   : > { %1094 = vmatprep.subr.mxu0 %v521_v46  ;;  %1139 = vmatprep.subr.mxu1 %v521_v46 }
 0x1c3   : > { %1095 = vmatpush3.msra.mxu0 %v521_v46  ;;  %1145 = vmatpush3.msra.mxu1 %v521_v46 }
 0x1c4   : > { %1096 = vmatprep.subr.mxu0 %v1081_v43  ;;  %1140 = vmatprep.subr.mxu1 %v1081_v43 }
 0x1c5   : > { %1097 = vmatpush3.msra.mxu0 %v1081_v43  ;;  %1146 = vmatpush3.msra.mxu1 %v1081_v43 }
 0x1c6   : > { %1098 = vmatprep.subr.mxu0 %v511_v44  ;;  %1141 = vmatprep.subr.mxu1 %v511_v44 }
 0x1c7   : > { %1099 = vmatpush3.msra.mxu0 %v511_v44  ;;  %1147 = vmatpush3.msra.mxu1 %v511_v44 }
 0x1c8   : > { %1113 = vmatmul.mubr.msk.f32.vlgmr.msra.gmra.mxu1 %vm564_vm2, %v549_v49  ;;  %1101 = vmatmul.mubr.msk.f32.vlgmr.msra.gmra.mxu0 %vm564_vm2, %v541_v50 }
 0x1c9   : > { %1115 = vmatprep.mubr.msk.f32.mxu1 %vm564_vm2, %v550_v51  ;;  %1103 = vmatprep.mubr.msk.f32.mxu0 %vm564_vm2, %v542_v52 }
 0x1cc   : > { %1116 = vmatmul.mubr.msk.f32.gmra.mxu1 %vm564_vm2, %v551_v53  ;;  %1104 = vmatmul.mubr.msk.f32.gmra.mxu0 %vm564_vm2, %v543_v54 }
 0x1cd   : > { %1118 = vmatprep.mubr.msk.f32.mxu1 %vm564_vm2, %v552_v55  ;;  %1106 = vmatprep.mubr.msk.f32.mxu0 %vm564_vm2, %v544_v56 }
 0x1d0   : > { %1119 = vmatmul.mubr.msk.f32.gmra.mxu1 %vm564_vm2, %v553_v57  ;;  %1107 = vmatmul.mubr.msk.f32.gmra.mxu0 %vm564_vm2, %v545_v58 }
 0x1d1   : > { %1121 = vmatprep.mubr.msk.f32.mxu1 %vm564_vm2, %v554_v59  ;;  %1109 = vmatprep.mubr.msk.f32.mxu0 %vm564_vm2, %v546_v60 }
 0x1d4   : > { %1122 = vmatmul.mubr.msk.f32.gmra.mxu1 %vm564_vm2, %v555_v61  ;;  %1110 = vmatmul.mubr.msk.f32.gmra.mxu0 %vm564_vm2, %v547_v62 }
 0x1d5   : > { %1124 = vmatprep.mubr.msk.f32.mxu1 %vm564_vm2, %v556_v63 }
 0x1d8   : > { %1125 = vmatmul.mubr.msk.f32.gmra.mxu1 %vm564_vm2, %v557_v0 }
 0x1d9   : > { %1127 = vmatprep.mubr.msk.f32.mxu1 %vm564_vm2, %v558_v1 }
 0x1dc   : > { %1128 = vmatmul.mubr.msk.f32.gmra.mxu1 %vm564_vm2, %v559_v2 }
 0x1dd   : > { %1130 = vmatprep.mubr.msk.f32.mxu1 %vm564_vm2, %v560_v3 }
 0x1e0   : > { %1131 = vmatmul.mubr.msk.f32.gmra.mxu1 %vm564_vm2, %v561_v4 }
 0x1e1   : > { %1133 = vmatprep.mubr.msk.f32.mxu1 %vm564_vm2, %v562_v5 }
 0x1e4   : > { %1134 = vmatmul.mubr.msk.f32.gmra.mxu1 %vm564_vm2, %v563_v6 }
 0x288   : > { %v1114_v7 = vpop.f32.mrf.mxu1  ;;  %v1102_v8 = vpop.f32.mrf.mxu0 }
 0x289   : > { %831 = vst [vmem:[%s1545_s13 + $0x48] sm:$0xff] %v1114_v7  ;;  %823 = vst [vmem:[%s1545_s13 + $0x8] sm:$0xff] %v1102_v8 }
 0x28a   : > { %v743_v9 = vpop.f32.mrf.mxu1  ;;  %v703_v10 = vpop.f32.mrf.mxu0 }
 0x28b   : > { %830 = vst [vmem:[%s1545_s13 + $0x40] sm:$0xff] %v743_v9  ;;  %822 = vst [vmem:[%s1545_s13] sm:$0xff] %v703_v10 }
 0x28c   : > { %v1117_v11 = vpop.f32.mrf.mxu1  ;;  %v1105_v12 = vpop.f32.mrf.mxu0 }
 0x28d   : > { %833 = vst [vmem:[%s1545_s13 + $0x58] sm:$0xff] %v1117_v11  ;;  %825 = vst [vmem:[%s1545_s13 + $0x18] sm:$0xff] %v1105_v12 }
 0x28e   : > { %v753_v13 = vpop.f32.mrf.mxu1  ;;  %v713_v14 = vpop.f32.mrf.mxu0 }
 0x28f   : > { %832 = vst [vmem:[%s1545_s13 + $0x50] sm:$0xff] %v753_v13  ;;  %824 = vst [vmem:[%s1545_s13 + $0x10] sm:$0xff] %v713_v14 }
 0x290   : > { %v1120_v15 = vpop.f32.mrf.mxu1  ;;  %v1108_v16 = vpop.f32.mrf.mxu0 }
 0x291   : > { %835 = vst [vmem:[%s1545_s13 + $0x68] sm:$0xff] %v1120_v15  ;;  %827 = vst [vmem:[%s1545_s13 + $0x28] sm:$0xff] %v1108_v16 }
 0x292   : > { %v763_v17 = vpop.f32.mrf.mxu1  ;;  %v723_v18 = vpop.f32.mrf.mxu0 }
 0x293   : > { %834 = vst [vmem:[%s1545_s13 + $0x60] sm:$0xff] %v763_v17  ;;  %826 = vst [vmem:[%s1545_s13 + $0x20] sm:$0xff] %v723_v18 }
 0x294   : > { %v1123_v19 = vpop.f32.mrf.mxu1  ;;  %v1111_v20 = vpop.f32.mrf.mxu0 }
 0x295   : > { %837 = vst [vmem:[%s1545_s13 + $0x78] sm:$0xff] %v1123_v19  ;;  %829 = vst [vmem:[%s1545_s13 + $0x38] sm:$0xff] %v1111_v20 }
 0x296   : > { %v773_v21 = vpop.f32.mrf.mxu1  ;;  %v733_v22 = vpop.f32.mrf.mxu0 }
 0x297   : > { %836 = vst [vmem:[%s1545_s13 + $0x70] sm:$0xff] %v773_v21  ;;  %828 = vst [vmem:[%s1545_s13 + $0x30] sm:$0xff] %v733_v22 }
 0x298   : > { %v1126_v23 = vpop.f32.mrf.mxu1 }
 0x299   : > { %839 = vst [vmem:[%s1545_s13 + $0x88] sm:$0xff] %v1126_v23 }
 0x29a   : > { %v783_v24 = vpop.f32.mrf.mxu1 }
 0x29b   : > { %838 = vst [vmem:[%s1545_s13 + $0x80] sm:$0xff] %v783_v24 }
 0x29c   : > { %v1129_v25 = vpop.f32.mrf.mxu1 }
 0x29d   : > { %841 = vst [vmem:[%s1545_s13 + $0x98] sm:$0xff] %v1129_v25 }
 0x29e   : > { %v793_v26 = vpop.f32.mrf.mxu1 }
 0x29f   : > { %840 = vst [vmem:[%s1545_s13 + $0x90] sm:$0xff] %v793_v26 }
 0x2a0   : > { %v1132_v27 = vpop.f32.mrf.mxu1 }
 0x2a1   : > { %843 = vst [vmem:[%s1545_s13 + $0xa8] sm:$0xff] %v1132_v27 }
 0x2a2   : > { %v803_v28 = vpop.f32.mrf.mxu1 }
 0x2a3   : > { %842 = vst [vmem:[%s1545_s13 + $0xa0] sm:$0xff] %v803_v28 }
 0x2a4   : > { %v1135_v29 = vpop.f32.mrf.mxu1 }
 0x2a5   : > { %845 = vst [vmem:[%s1545_s13 + $0xb8] sm:$0xff] %v1135_v29 }
 0x2a6   : > { %v813_v30 = vpop.f32.mrf.mxu1 }
 0x2a7   : > { %844 = vst [vmem:[%s1545_s13 + $0xb0] sm:$0xff] %v813_v30 }
 0x2a8   : > { %1239 = shalt.err (!%p1236_p7)
}
 0x2a9   : > { %s1240_s21 = scalar_lea.hbm %s1574_s22, 3072  ;;  %s1244_s14 = scalar_lea.hbm %s1639_s5, 12288 }
 0x2aa   : > { %p1241_p9 = scmp.ne.s32.totalorder %s1574_s22, %s1240_s21  ;;  %p1245_p12 = scmp.lt.s32.totalorder %s1574_s22, %s1639_s5 }
 0x2ab   : > { %p1246_p13 = scmp.lt.s32.totalorder %s1244_s14, %s1240_s21 }
 0x2ac   : > { %p1242_p10 = pnand %p1241_p9, %p1405_p3 }
 0x2ad   : > { %p1247_p0 = por %p1246_p13, %p1245_p12 }
 0x2ae   : > { %p1243_p11 = pneg %p1242_p10 }
 0x2b0   : > { %p1248_p1 = pnand %p1247_p0, %p1243_p11 }
 0x2b2   : > { %1251 = shalt.err (!%p1248_p1)
}
 0x2b3   : > { %s1322_s29 = smov 128   ;;  %s1323_s27 = smov 8  }
 0x2b4   : > { %1150 = dma.vmem_to_hbm [thread:$0]  (%p1405_p3), %s1577_s17, 3072, %s1574_s22, %s1583_s26, %s1322_s29, %s1322_s29, %s1323_s27  }
 0x2b5 PF: > { %p1156_p2 = scmp.ge.s32.totalorder %s1318_s25, 2  ;;  %s877_s30 = sand.u32 1, %s1290_s18  }
 0x2b6   : > { %s878_s8 = scalar_lea.sflag [#allocation3], %s877_s30 }
 0x2b7   : > { %p1153_p4 = pnand %p1156_p2, %p1414_p8 }
 0x2b9   : > { %p1154_p5 = pneg %p1153_p4 }
 0x2bb   : > { %1285 = dma.done.wait (%p1154_p5), %s878_s8, 3072  }
 0x2bc   : > { %1287 = vsyncadd (%p1154_p5), %s878_s8, 4294964224  ;;  %s18_s25 = sadd.s32 1, %s1318_s25   ;;  %s1644_s6 = sld [smem:[#allocation5_spill]] }
 0x2bd   : > { %p15_p6 = scmp.ge.s32.totalorder %s18_s25, 6   ;;  %s1645_s18 = smov %s1294_s19 }
 0x2be   : > { %s1646_s19 = smov %s1298_s20  ;;  %s1647_s20 = smov %s1423_s11 }
 0x2bf   : > { %s1648_s21 = smov %s1310_s23  ;;  %s1649_s22 = smov %s1314_s24 }
 0x2c0   : > { %s1650_s23 = smov %s1653_s28  ;;  %17 = sbr.rel (!%p15_p6) target bundleno = 5 (0x5), region = 78 }
 0x2c2   : > { %s1651_s24 = smov %s1644_s6 }
 0x2c5   :  { %883 = vsyncpa [#allocation3], 1 }
 0x2c6   :  { %885 = vsyncpa [#allocation3 + $0x1], 1 }

</bundles_post_ra>
